<compile_context>
chip_gen: v5e
topology: v5e:2x2
jax: 0.10.0
libtpu: 0.0.40
codegen_flags: <defaults>
</compile_context>

<pallas_src>
import jax
import jax.numpy as jnp
from jax.experimental import pallas as pl
from jax.experimental.pallas import tpu as pltpu


def _wtac_thresh_kernel(dist_ref, colk_ref, labels_ref, theta_ref, scal_ref, out_ref):
    d = dist_ref[...].astype(jnp.float32)      # (TB, P), upcast in-register
    colk = colk_ref[...]                        # (1, P) int32 : col * K
    labels = labels_ref[...]                    # (1, P) int32
    theta = theta_ref[...]                      # (1, P) float32
    outlier = scal_ref[0]                       # SMEM scalar: max(labels) + 1
    kmask = scal_ref[1]                         # K - 1  (K = power of two > outlier)
    neutral = scal_ref[2]                       # P*K + outlier (> every real key)

    # Per-lane candidate label: prototype's label if inside its Voronoi boundary,
    # else the outlier label.  Pack (column, candidate) into one int32 key so the
    # winner gather + tie-break is a single cross-lane min.
    cand = jnp.where(theta - d > 0.0, labels, outlier)                    # (TB, P) int32
    key = colk + cand                                                     # col*K dominates

    min_d = jnp.min(d, axis=1, keepdims=True)                             # XLU reduce 1
    key_min = jnp.min(jnp.where(d == min_d, key, neutral),
                      axis=1, keepdims=True)                              # XLU reduce 2
    # Degenerate rows (empty mask, e.g. all-NaN) fall through to `neutral`,
    # whose low bits are exactly the outlier label.
    out_ref[...] = jnp.bitwise_and(key_min, kmask)                        # (TB, 1) int32


def _round_up(x, m):
    return ((x + m - 1) // m) * m


def _vmem_capacity_bytes():
    try:
        info = pltpu.get_tpu_info()
        for attr in ("vmem_capacity_bytes", "vmem_bytes", "vmem_size_bytes"):
            v = getattr(info, attr, None)
            if v:
                return int(v)
    except Exception:
        pass
    return 64 * 1024 * 1024  # be conservative: assume v7x (64 MiB per TC)


def _pick_tiling(B, P, itemsize):
    lane_p = _round_up(P, 128)                  # lanes are padded to 128 in VMEM
    sublane = 8 * (4 // itemsize)               # 8 for f32, 16 for bf16/f16
    vmem_cap = _vmem_capacity_bytes()
    if vmem_cap >= 100 * 1024 * 1024:           # v5e / v6e: 128 MiB physical VMEM
        buf_budget = 14 * 1024 * 1024
        vmem_limit = 64 * 1024 * 1024
    else:                                       # v7x: 64 MiB per TensorCore
        buf_budget = 5 * 1024 * 1024
        vmem_limit = 48 * 1024 * 1024
    # Honest per-row VMEM footprint: 2x double-buffered input tile + f32 upcast
    # copy (sub-32-bit inputs) + ~3 int32 temporaries (cand / key / masked key).
    per_row = 2 * itemsize * lane_p + (4 * lane_p if itemsize < 4 else 0) + 12 * lane_p
    rows = min(buf_budget // max(1, itemsize * lane_p),
               (3 * vmem_limit // 4) // max(1, per_row))
    tb = max(sublane, (int(rows) // sublane) * sublane)
    return tb, sublane, vmem_limit


def wtac_thresh(distances, labels, theta_boundary, *, block_rows=None,
                vmem_limit_bytes=None):
    """distances: (B, P) float, labels: (P,) int, theta_boundary: (P,) or scalar -> (B,) int32."""
    distances = jnp.asarray(distances)
    if not any(distances.dtype == d for d in (jnp.float32, jnp.bfloat16, jnp.float16)):
        distances = distances.astype(jnp.float32)   # f32/bf16/f16 stream through as-is
    B, P = distances.shape
    itemsize = distances.dtype.itemsize

    labels2d = jnp.asarray(labels, jnp.int32).reshape(1, P)
    theta2d = jnp.broadcast_to(
        jnp.asarray(theta_boundary, jnp.float32), (P,)).reshape(1, P)

    # Outlier label (torch: max(labels)+1) and packed-key constants, hoisted to the
    # wrapper (cheap scalar / (1,P) work; no per-tile XLU reduction in the kernel).
    outlier = (jnp.max(labels2d) + 1).astype(jnp.int32)
    v = outlier                                            # smallest power of two > outlier
    v = v | (v >> 1); v = v | (v >> 2); v = v | (v >> 4); v = v | (v >> 8); v = v | (v >> 16)
    K = (v + 1).astype(jnp.int32)
    kmask = (K - 1).astype(jnp.int32)
    neutral = (P * K + outlier).astype(jnp.int32)          # > every real key; & kmask == outlier
    colk2d = (jnp.arange(P, dtype=jnp.int32) * K).reshape(1, P)

    # Packed-key assumptions (only checkable when labels are concrete).
    try:
        _o, _k = int(outlier), int(K)
    except Exception:   # traced under jit: rely on the documented contract
        _o = _k = None
    if _o is not None:
        assert _o >= 1 and P * _k + _o < 2 ** 31, (
            "wtac_thresh packed-key fusion needs labels >= 0 and "
            "P * next_pow2(max(labels)+2) + max(labels) + 1 < 2**31")

    scal = jnp.stack([outlier, kmask, neutral]).astype(jnp.int32)   # SMEM scalars

    tb, sublane, auto_vmem_limit = _pick_tiling(B, P, itemsize)
    if block_rows is not None:                              # explicit override (tests)
        tb = min(tb, max(sublane, (int(block_rows) // sublane) * sublane))
    tb = min(tb, _round_up(B, sublane))
    # Give v7x's two TensorCores something to split along the "parallel" axis.
    if B > 2 * sublane and pl.cdiv(B, tb) < 2:
        tb = _round_up(pl.cdiv(B, 2), sublane)
    if vmem_limit_bytes is None:
        vmem_limit_bytes = auto_vmem_limit

    grid = (pl.cdiv(B, tb),)                                # ragged last tile: no jnp.pad

    out = pl.pallas_call(
        _wtac_thresh_kernel,
        out_shape=jax.ShapeDtypeStruct((B, 1), jnp.int32),
        grid=grid,
        in_specs=[
            pl.BlockSpec((tb, P), lambda i: (i, 0)),             # streamed distance tiles
            pl.BlockSpec((1, P), lambda i: (0, 0)),              # col*K   (resident)
            pl.BlockSpec((1, P), lambda i: (0, 0)),              # labels  (resident)
            pl.BlockSpec((1, P), lambda i: (0, 0)),              # theta   (resident)
            pl.BlockSpec(memory_space=pltpu.MemorySpace.SMEM),   # [outlier, K-1, neutral]
        ],
        out_specs=pl.BlockSpec((tb, 1), lambda i: (i, 0)),
        compiler_params=pltpu.CompilerParams(
            dimension_semantics=("parallel",),
            vmem_limit_bytes=int(vmem_limit_bytes),
        ),
    )(distances, colk2d, labels2d, theta2d, scal)
    return out[:, 0]


def _reference(distances, labels, theta_boundary):
    """Pure-JAX reference mirroring the PyTorch semantics."""
    widx = jnp.argmin(distances, axis=1)
    wlab = labels[widx]
    ib = (theta_boundary - distances)[jnp.arange(distances.shape[0]), widx]
    return jnp.where(ib > 0.0, wlab, jnp.max(labels) + 1)


class WTAC_Thresh:
    """Thin wrapper mirroring the torch module."""

    def __init__(self, theta_boundary):
        self.theta_boundary = theta_boundary

    def __call__(self, distances, labels):
        return wtac_thresh(distances, labels, self.theta_boundary)


if __name__ == "__main__":
    key = jax.random.PRNGKey(0)
    B, P = 8, 16  # batch of 8 samples, 16 prototypes

    k1, k2, k3 = jax.random.split(key, 3)
    distances = jax.random.uniform(k1, (B, P), jnp.float32, minval=0.0, maxval=2.0)
    labels = jax.random.randint(k2, (P,), 0, 3, dtype=jnp.int32)
    theta_boundary = jnp.full((P,), 0.75, dtype=jnp.float32)  # per-prototype boundary

    module = WTAC_Thresh(theta_boundary)
    out = module(distances, labels)
    jax.block_until_ready(out)
    ref = _reference(distances, labels, theta_boundary)
    assert out.shape == (B,)
    assert jnp.array_equal(out, ref), (out, ref)

    # Ragged multi-tile grid (no wrapper padding): 3 batch tiles, last one partial.
    B2 = 40
    d2 = jax.random.uniform(k3, (B2, P), jnp.float32, minval=0.0, maxval=2.0)
    out2 = wtac_thresh(d2, labels, theta_boundary, block_rows=16)
    jax.block_until_ready(out2)
    ref2 = _reference(d2, labels, theta_boundary)
    assert out2.shape == (B2,)
    assert jnp.array_equal(out2, ref2), (out2, ref2)

    # bf16 streamed-through path (in-register upcast) + >=2-step grid split.
    B3 = 48
    d3 = jax.random.uniform(jax.random.PRNGKey(7), (B3, P), jnp.float32,
                            minval=0.0, maxval=2.0).astype(jnp.bfloat16)
    out3 = wtac_thresh(d3, labels, theta_boundary)
    jax.block_until_ready(out3)
    ref3 = _reference(d3.astype(jnp.float32), labels, theta_boundary)
    assert out3.shape == (B3,)
    assert jnp.array_equal(out3, ref3), (out3, ref3)

    print("KERNEL_OK")
</pallas_src>

<mosaic_0001>
module attributes {stable_mosaic.version = 11 : i64} {
  func.func @_wtac_thresh_kernel(%arg0: i32, %arg1: memref<8x16xf32, #tpu.memory_space<vmem>>, %arg2: memref<1x16xi32, #tpu.memory_space<vmem>>, %arg3: memref<1x16xi32, #tpu.memory_space<vmem>>, %arg4: memref<1x16xf32, #tpu.memory_space<vmem>>, %arg5: memref<3xi32, #tpu.memory_space<smem>>, %arg6: memref<8x1xi32, #tpu.memory_space<vmem>>) attributes {dimension_semantics = [#tpu.dimension_semantics<parallel>], iteration_bounds = array<i64: 1>, scalar_prefetch = 0 : i64, scratch_operands = 0 : i64, tpu.core_type = #tpu.core_type<tc>, window_params = [{transform_indices = @transform_0, window_bounds = array<i64: 8, 16>}, {pipeline_mode = #tpu.pipeline_mode<synchronous>, transform_indices = @transform_1, window_bounds = array<i64: 1, 16>}, {pipeline_mode = #tpu.pipeline_mode<synchronous>, transform_indices = @transform_2, window_bounds = array<i64: 1, 16>}, {pipeline_mode = #tpu.pipeline_mode<synchronous>, transform_indices = @transform_3, window_bounds = array<i64: 1, 16>}, {transform_indices = @transform_4, window_bounds = array<i64: 3>}, {transform_indices = @transform_5, window_bounds = array<i64: 8, 1>}]} {
    %c0 = arith.constant 0 : index
    %c0_0 = arith.constant 0 : index
    %0 = vector.load %arg1[%c0, %c0_0] : memref<8x16xf32, #tpu.memory_space<vmem>>, vector<8x16xf32>
    %c0_1 = arith.constant 0 : index
    %c0_2 = arith.constant 0 : index
    %1 = vector.load %arg2[%c0_1, %c0_2] : memref<1x16xi32, #tpu.memory_space<vmem>>, vector<1x16xi32>
    %c0_3 = arith.constant 0 : index
    %c0_4 = arith.constant 0 : index
    %2 = vector.load %arg3[%c0_3, %c0_4] : memref<1x16xi32, #tpu.memory_space<vmem>>, vector<1x16xi32>
    %c0_5 = arith.constant 0 : index
    %c0_6 = arith.constant 0 : index
    %3 = vector.load %arg4[%c0_5, %c0_6] : memref<1x16xf32, #tpu.memory_space<vmem>>, vector<1x16xf32>
    %c0_7 = arith.constant 0 : index
    %4 = memref.load %arg5[%c0_7] : memref<3xi32, #tpu.memory_space<smem>>
    %c1 = arith.constant 1 : index
    %5 = memref.load %arg5[%c1] : memref<3xi32, #tpu.memory_space<smem>>
    %c2 = arith.constant 2 : index
    %6 = memref.load %arg5[%c2] : memref<3xi32, #tpu.memory_space<smem>>
    %7 = vector.broadcast %3 : vector<1x16xf32> to vector<8x16xf32>
    %8 = arith.subf %7, %0 : vector<8x16xf32>
    %cst = arith.constant 0.000000e+00 : f32
    %9 = vector.broadcast %cst : f32 to vector<8x16xf32>
    %10 = arith.cmpf ogt, %8, %9 : vector<8x16xf32>
    %11 = vector.shape_cast %2 : vector<1x16xi32> to vector<1x16xi32>
    %12 = vector.broadcast %11 : vector<1x16xi32> to vector<8x16xi32>
    %13 = vector.broadcast %4 : i32 to vector<8x16xi32>
    %14 = arith.select %10, %12, %13 : vector<8x16xi1>, vector<8x16xi32>
    %15 = vector.broadcast %1 : vector<1x16xi32> to vector<8x16xi32>
    %16 = arith.addi %15, %14 : vector<8x16xi32>
    %cst_8 = arith.constant dense<0x7F800000> : vector<8xf32>
    %17 = vector.multi_reduction <minimumf>, %0, %cst_8 [1] : vector<8x16xf32> to vector<8xf32>
    %18 = vector.shape_cast %17 : vector<8xf32> to vector<8x1xf32>
    %19 = vector.broadcast %18 : vector<8x1xf32> to vector<8x16xf32>
    %20 = arith.cmpf oeq, %0, %19 : vector<8x16xf32>
    %21 = vector.broadcast %6 : i32 to vector<8x16xi32>
    %22 = arith.select %20, %16, %21 : vector<8x16xi1>, vector<8x16xi32>
    %cst_9 = arith.constant dense<2147483647> : vector<8xi32>
    %23 = vector.multi_reduction <minsi>, %22, %cst_9 [1] : vector<8x16xi32> to vector<8xi32>
    %24 = vector.shape_cast %23 : vector<8xi32> to vector<8x1xi32>
    %25 = vector.broadcast %5 : i32 to vector<8x1xi32>
    %26 = arith.andi %24, %25 : vector<8x1xi32>
    %c0_10 = arith.constant 0 : index
    %c0_11 = arith.constant 0 : index
    %27 = vector.load %arg6[%c0_10, %c0_11] : memref<8x1xi32, #tpu.memory_space<vmem>>, vector<8x1xi32>
    tpu.vector_store %arg6[%c0_10, %c0_11], %26 {strides = array<i32>} : memref<8x1xi32, #tpu.memory_space<vmem>>, vector<8x1xi32>,
    return
  }
  func.func @transform_0(%arg0: i32) -> (i32, i32) {
    %c0_i32 = arith.constant 0 : i32
    %c0_i32_0 = arith.constant 0 : i32
    return %arg0, %c0_i32 : i32, i32
  }
  func.func @transform_1(%arg0: i32) -> (i32, i32) {
    %c0_i32 = arith.constant 0 : i32
    %c0_i32_0 = arith.constant 0 : i32
    %c0_i32_1 = arith.constant 0 : i32
    return %c0_i32, %c0_i32_0 : i32, i32
  }
  func.func @transform_2(%arg0: i32) -> (i32, i32) {
    %c0_i32 = arith.constant 0 : i32
    %c0_i32_0 = arith.constant 0 : i32
    %c0_i32_1 = arith.constant 0 : i32
    return %c0_i32, %c0_i32_0 : i32, i32
  }
  func.func @transform_3(%arg0: i32) -> (i32, i32) {
    %c0_i32 = arith.constant 0 : i32
    %c0_i32_0 = arith.constant 0 : i32
    %c0_i32_1 = arith.constant 0 : i32
    return %c0_i32, %c0_i32_0 : i32, i32
  }
  func.func @transform_4(%arg0: i32) -> i32 {
    %c0_i32 = arith.constant 0 : i32
    %c0_i32_0 = arith.constant 0 : i32
    return %c0_i32 : i32
  }
  func.func @transform_5(%arg0: i32) -> (i32, i32) {
    %c0_i32 = arith.constant 0 : i32
    %c0_i32_0 = arith.constant 0 : i32
    return %arg0, %c0_i32 : i32, i32
  }
}

</mosaic_0001>

<bundles_post_ra>
// kernel: tpu_custom_call.1
= control target key start
LH: loop header
LB: loop body
LE: loop exit
PB: predicated region body
PF: predicated region fallthrough
CT: control target
= control target key end

     0   :  { %10 = vsyncpa [#allocation3], 0  ;;  %s238_s0 = inlined_call_operand.hbm [shape: f32[8,16], index: 0, kind: input, shape index: {}]   ;;  %s239_s1 = inlined_call_operand.hbm [shape: s32[1,16], index: 1, kind: input, shape index: {}]   ;;  %s240_s2 = inlined_call_operand.vmem [shape: s32[1,16], index: 2, kind: input, shape index: {}]   ;;  %s241_s3 = inlined_call_operand.vmem [shape: f32[1,16], index: 3, kind: input, shape index: {}]   ;;  %s242_s4 = inlined_call_operand.vmem [shape: s32[3], index: 4, kind: input, shape index: {}]   ;;  %s243_s5 = inlined_call_operand.vmem [shape: s32[8,1], index: 5, kind: output, shape index: {}]  }
   0x1   :  { %11 = vsyncpa [#allocation6], 0  ;;  %s18_s20 = sshll.u32 %s238_s0, 4  ;;  %s19_s20 = int_to_ptr.hbm [resolvable:$true] %s18_s20 }
   0x2   :  { %12 = vsyncpa [#allocation4], 0  ;;  %s185_s21 = smov [#allocation2]   ;;  %s29_s25 = sshll.u32 %s239_s1, 4  ;;  %s30_s25 = int_to_ptr.hbm [resolvable:$true] %s29_s25 }
   0x3   :  { %s20_s22 = sshll.u32 %s185_s21, 4  ;;  %s186_s26 = smov [#allocation5]   ;;  %s21_s22 = int_to_ptr.vmem [resolvable:$true] %s20_s22 }
   0x4   :  { %23 = dma.hbm_to_vmem [thread:$0]  %s19_s20, 128, %s21_s22, [#allocation3]  }
   0x5   :  { %s31_s27 = sshll.u32 %s186_s26, 4  ;;  %s44_s30 = sshll.u32 %s242_s4, 4  ;;  %s32_s27 = int_to_ptr.vmem [resolvable:$true] %s31_s27  ;;  %s45_s30 = int_to_ptr.vmem [resolvable:$true] %s44_s30 }
   0x6   :  { %34 = dma.hbm_to_vmem [thread:$0]  %s30_s25, 16, %s32_s27, [#allocation6]  }
   0x7   :  { %s187_s0 = smov [#allocation7]  }
   0x8   :  { %47 = dma.vmem_to_smem %s45_s30, 16, %s187_s0, [#allocation4]  }
   0x9   :  { %179 = dma.done.wait [#allocation3], 128  }
   0xa   :  { %180 = vsyncadd [#allocation3], 4294967168 }
   0xb   :  { %181 = dma.done.wait [#allocation6], 16  }
   0xc   :  { %182 = vsyncadd [#allocation6], 4294967280 }
   0xd   :  { %183 = dma.done.wait [#allocation4], 16  }
   0xe   :  { %184 = vsyncadd [#allocation4], 4294967280 }
   0xf   :  { %60 = sfence }
  0x10   :  { %v61_v0 = vld [vmem:[#allocation2] sm:$0xff]  ;;  %vm78_vm0 = vcmask 130048   ;;  %s65_s1 = sld [smem:[#allocation7]]  ;;  %v118_v6 = vld [vmem:[#allocation5] ss:$0 sm:$0xff]  ;;  %vm102_vm4 = vcmask 7168  }
  0x11   :  { %v79_v1 = vsel %vm78_vm0, %v61_v0, inf  ;;  %v116_v2 = vld [vmem:[%s241_s3] ss:$0 sm:$0xff]  ;;  %s112_s9 = sld [smem:[#allocation7 + $0x2]] }
  0x12   :  { %80 = vmin.xlane.f32.xlu0 %v79_v1  ;;  %v71_v3 = vsub.f32 %v116_v2, %v61_v0  ;;  %v117_v4 = vld [vmem:[%s240_s2] ss:$0 sm:$0xff]  ;;  %s111_s2 = sld [smem:[#allocation7 + $0x1]] }
  0x14   :  { %vm72_vm1 = vcmp.gt.f32.partialorder %v71_v3, 0.0 }
  0x16   :  { %v74_v5 = vstv %s65_s1 }
  0x17   :  { %v75_v7 = vsel %vm72_vm1, %v117_v4, %v74_v5  ;;  %v83_v9 = vstv %s112_s9 }
  0x18   :  { %v77_v8 = vadd.s32 %v118_v6, %v75_v7  ;;  %v100_v23 = vstv %s111_s2 }
  0x85   :  { %v81_v10 = vpop.xlane.xlu0 %80 }
  0x86   :  { %vm82_vm2 = vcmp.eq.f32.partialorder %v61_v0, %v81_v10 }
  0x87   :  { %v84_v11 = vsel %vm82_vm2, %v77_v8, %v83_v9 }
  0x88   :  { %v85_v12 = vsel %vm78_vm0, %v84_v11, 2147483647 }
  0x89   :  { %v87_v13 = vshra.s32 %v85_v12, 16  ;;  %v86_v15 = vand.u32 65535, %v85_v12 }
  0x8b   :  { %v89_v14 = vcvt.s32.f32 %v87_v13  ;;  %v88_v17 = vcvt.s32.f32 %v86_v15 }
  0x8d   :  { %90 = vmin.xlane.f32.xlu0 %v89_v14 }
 0x100   :  { %v91_v16 = vpop.xlane.xlu0 %90 }
 0x101   :  { %vm92_vm3 = vcmp.eq.f32.partialorder %v89_v14, %v91_v16  ;;  %v97_v19 = vcvt.f32.s32 %v91_v16 }
 0x102   :  { %v93_v18 = vsel %vm92_vm3, %v88_v17, inf }
 0x103   :  { %94 = vmin.xlane.f32.xlu1 %v93_v18  ;;  %v98_v21 = vshll.u32 %v97_v19, 16 }
 0x176   :  { %v95_v20 = vpop.xlane.xlu1 %94 }
 0x177   :  { %v96_v22 = vcvt.f32.s32 %v95_v20 }
 0x179   :  { %v99_v24 = vadd.s32 %v98_v21, %v96_v22 }
 0x17b   :  { %v101_v25 = vand.u32 %v100_v23, %v99_v24 }
 0x17d   :  { %103 = vst.msk [vmem:[%s243_s5] sm:$0xff] %vm102_vm4, %v101_v25 }
 0x17e   :  { %108 = vsyncpa [#allocation3], 1 }
 0x17f   :  { %109 = vsyncpa [#allocation6], 1 }
 0x180   :  { %110 = vsyncpa [#allocation4], 1 }

</bundles_post_ra>
